<compile_context>
chip_gen: v7x
topology: tpu7x:2x2x1
jax: 0.10.0
libtpu: 0.0.40
codegen_flags: <defaults>
</compile_context>

<pallas_src>
import jax
import jax.numpy as jnp
from jax import lax
from jax.experimental import pallas as pl
from jax.experimental.pallas import tpu as pltpu


def _round_up(x, m):
    return (x + m - 1) // m * m


# --------------------------- fused conv kernel --------------------------------

def _make_kernel(KH, KW, pad, H, W, Ho, Wo, Cin, Coutp, res_c):
    """Fused stride-1 (KHxKW, pad) conv + folded-BN bias + ReLU (+residual+ReLU).

    Refs per grid step (one batch element):
      x_ref : (1, H, W, Cin)           input tile (f32 or bf16)
      w_ref : (KH*KW*Cin, Coutp) bf16  BN-scale-folded, tap-flattened weights
      b_ref : (1, Coutp) f32           folded BN bias
      r_ref : (1, Ho*Wo, res_c)        [only when res_c is not None]
      o_ref : (1, Ho*Wo, Coutp)
      xpad  : (H+2p, W+2p, Cin) VMEM scratch  [only when pad > 0]
    """
    K = KH * KW * Cin

    def kernel(*refs):
        if res_c is not None:
            x_ref, w_ref, b_ref, r_ref, o_ref = refs[:5]
            scratch = refs[5:]
        else:
            x_ref, w_ref, b_ref, o_ref = refs[:4]
            r_ref = None
            scratch = refs[4:]

        if pad:
            xpad_ref = scratch[0]
            # In-kernel halo: zero-fill scratch, write the interior (no host pad).
            xpad_ref[...] = jnp.zeros(xpad_ref.shape, xpad_ref.dtype)
            xpad_ref[pl.ds(pad, H), pl.ds(pad, W), :] = x_ref[0]
            xp = xpad_ref[...]
        else:
            xp = x_ref[0]

        # im2col in VMEM: fuse every tap into the contraction dim -> ONE matmul.
        taps = []
        for kh in range(KH):
            for kw in range(KW):
                taps.append(lax.slice(xp, (kh, kw, 0), (kh + Ho, kw + Wo, Cin)))
        pat = taps[0] if len(taps) == 1 else jnp.concatenate(taps, axis=-1)
        pat = pat.reshape(Ho * Wo, K).astype(jnp.bfloat16)

        acc = jnp.dot(pat, w_ref[...], preferred_element_type=jnp.float32)
        y = jnp.maximum(acc + b_ref[...], 0.0)              # folded BN + ReLU
        if r_ref is not None:
            res = r_ref[0].astype(jnp.float32)
            if res_c < Coutp:                               # zero-extend channels
                res = jnp.concatenate(
                    [res, jnp.zeros((Ho * Wo, Coutp - res_c), jnp.float32)],
                    axis=-1)
            y = jnp.maximum(y + res, 0.0)                   # residual + block ReLU
        o_ref[0] = y.astype(o_ref.dtype)

    return kernel


def conv_bn_relu(x_nhwc, w_hwio, scale, bias, *, pad, out_hw, coutp,
                 residual=None, out_dtype=jnp.float32):
    """Fused stride-1 Conv2d(bias=False)+BN(eval)+ReLU (+optional residual+ReLU).

    x_nhwc : (N, H, W, Cin); w_hwio : (KH, KW, Cin, Cout).
    Returns (N, Ho*Wo, coutp) with channels [Cout, coutp) identically zero.
    """
    N, H, W, Cin = x_nhwc.shape
    KH, KW, Cin_w, Cout = w_hwio.shape
    assert Cin == Cin_w
    Ho, Wo = out_hw
    K = KH * KW * Cin

    # Fold BN scale into the weights, flatten taps into K, pad Cout, cast bf16.
    wf = (w_hwio * scale[None, None, None, :]).reshape(K, Cout)
    wf = jnp.pad(wf, ((0, 0), (0, coutp - Cout))).astype(jnp.bfloat16)
    bf = jnp.pad(bias, (0, coutp - Cout)).reshape(1, coutp).astype(jnp.float32)

    res_c = None if residual is None else residual.shape[-1]
    kernel = _make_kernel(KH, KW, pad, H, W, Ho, Wo, Cin, coutp, res_c)

    in_specs = [
        pl.BlockSpec((1, H, W, Cin), lambda n: (n, 0, 0, 0)),
        pl.BlockSpec((K, coutp), lambda n: (0, 0)),
        pl.BlockSpec((1, coutp), lambda n: (0, 0)),
    ]
    operands = [x_nhwc, wf, bf]
    if residual is not None:
        in_specs.append(pl.BlockSpec((1, Ho * Wo, res_c), lambda n: (n, 0, 0)))
        operands.append(residual)

    scratch_shapes = []
    if pad:
        scratch_shapes.append(
            pltpu.VMEM((H + 2 * pad, W + 2 * pad, Cin), x_nhwc.dtype))

    return pl.pallas_call(
        kernel,
        out_shape=jax.ShapeDtypeStruct((N, Ho * Wo, coutp), out_dtype),
        grid_spec=pltpu.PrefetchScalarGridSpec(
            num_scalar_prefetch=0,
            grid=(N,),
            in_specs=in_specs,
            out_specs=pl.BlockSpec((1, Ho * Wo, coutp), lambda n: (n, 0, 0)),
            scratch_shapes=scratch_shapes,
        ),
        compiler_params=pltpu.CompilerParams(
            dimension_semantics=("parallel",),
            vmem_limit_bytes=32 * 1024 * 1024),
    )(*operands)


# ----------------------- stride-2 -> stride-1 rewriting -----------------------

def _space_to_depth(x):
    """(N, H, W, C) -> (N, H//2, W//2, 4C); channel block index = 2a+b."""
    N, H, W, C = x.shape
    x = x.reshape(N, H // 2, 2, W // 2, 2, C)
    x = jnp.transpose(x, (0, 1, 3, 2, 4, 5))
    return x.reshape(N, H // 2, W // 2, 4 * C)


def _s2d_weight_3x3(w):
    """(3,3,Cin,Cout) stride-2 weight -> equivalent (2,2,4Cin,Cout) stride-1 weight."""
    KH, KW, Cin, Cout = w.shape
    w4 = jnp.zeros((2, 2, 4 * Cin, Cout), w.dtype)
    for dh in range(2):
        for a in range(2):
            kh = 2 * dh + a
            if kh >= KH:
                continue
            for dw in range(2):
                for b in range(2):
                    kw = 2 * dw + b
                    if kw >= KW:
                        continue
                    blk = (2 * a + b) * Cin
                    w4 = w4.at[dh, dw, blk:blk + Cin, :].set(w[kh, kw])
    return w4


def _s2d_weight_1x1(wd):
    """(1,1,Cin,Cout) stride-2 weight -> (1,1,4Cin,Cout) stride-1 weight
    acting on the space-to-depth of the pad-1 input (only sub-cell a=b=1)."""
    _, _, Cin, Cout = wd.shape
    w4 = jnp.zeros((1, 1, 4 * Cin, Cout), wd.dtype)
    return w4.at[0, 0, 3 * Cin:, :].set(wd[0, 0])


def _fold_bn(gamma, beta, mean, var, eps=1e-5):
    scale = gamma / jnp.sqrt(var + eps)
    return scale, beta - mean * scale


# ------------------------------ BasicBlock -------------------------------------

def basic_block_forward(x_nchw, params, stride):
    """BasicBlock forward (inference). x_nchw: (N, Cin, H, W) -> (N, Cout, Ho, Wo)."""
    N, Cin, H, W = x_nchw.shape
    Cout = params["w1"].shape[-1]
    coutp = _round_up(Cout, 128)   # lane-dense channel dim for all kernel outputs

    # TODO(synk): a full network should keep activations NHWC end-to-end; the
    # NCHW<->NHWC transposes here only exist to honor the PyTorch interface.
    x_nhwc = jnp.transpose(x_nchw, (0, 2, 3, 1))

    s1, b1 = _fold_bn(*params["bn1"])
    s2, b2 = _fold_bn(*params["bn2"])

    if stride != 1:
        assert stride == 2 and H % 2 == 0 and W % 2 == 0
        Ho, Wo = H // 2, W // 2
        # One-time space-to-depth relayout (pad=1 folded in): both stride-2
        # convs of this block become stride-1 convs over the same tensor.
        x_s2d = _space_to_depth(jnp.pad(x_nhwc, ((0, 0), (1, 1), (1, 1), (0, 0))))
        h1 = conv_bn_relu(x_s2d, _s2d_weight_3x3(params["w1"]), s1, b1,
                          pad=0, out_hw=(Ho, Wo), coutp=coutp,
                          out_dtype=jnp.bfloat16)
        sd, bd = _fold_bn(*params["bnd"])
        identity = conv_bn_relu(x_s2d, _s2d_weight_1x1(params["wd"]), sd, bd,
                                pad=0, out_hw=(Ho, Wo), coutp=coutp,
                                out_dtype=jnp.bfloat16)
    else:
        assert Cin == Cout, "identity shortcut requires matching channel counts"
        Ho, Wo = H, W
        h1 = conv_bn_relu(x_nhwc, params["w1"], s1, b1,
                          pad=1, out_hw=(Ho, Wo), coutp=coutp,
                          out_dtype=jnp.bfloat16)
        identity = x_nhwc.reshape(N, H * W, Cin)

    # comp2 (3x3, s1, pad=1) + BN + ReLU, fused with residual add + block ReLU.
    w2p = jnp.pad(params["w2"], ((0, 0), (0, 0), (0, coutp - Cout), (0, 0)))
    out = conv_bn_relu(h1.reshape(N, Ho, Wo, coutp), w2p, s2, b2,
                       pad=1, out_hw=(Ho, Wo), coutp=coutp,
                       residual=identity, out_dtype=jnp.float32)
    out = out.reshape(N, Ho, Wo, coutp)[..., :Cout]
    return jnp.transpose(out, (0, 3, 1, 2))


# ----------------------------- pure-JAX reference -----------------------------

def _ref_conv_bn_relu(x_nchw, w_hwio, scale, bias, stride, padding):
    y = lax.conv_general_dilated(
        x_nchw, w_hwio,
        window_strides=(stride, stride),
        padding=[(padding, padding), (padding, padding)],
        dimension_numbers=("NCHW", "HWIO", "NCHW"),
        precision=lax.Precision.HIGHEST)
    y = y * scale[None, :, None, None] + bias[None, :, None, None]
    return jnp.maximum(y, 0.0)


def basic_block_reference(x_nchw, params, stride):
    s1, b1 = _fold_bn(*params["bn1"])
    s2, b2 = _fold_bn(*params["bn2"])
    if stride != 1:
        sd, bd = _fold_bn(*params["bnd"])
        identity = _ref_conv_bn_relu(x_nchw, params["wd"], sd, bd, stride, 0)
    else:
        identity = x_nchw
    h = _ref_conv_bn_relu(x_nchw, params["w1"], s1, b1, stride, 1)
    h = _ref_conv_bn_relu(h, params["w2"], s2, b2, 1, 1)
    return jnp.maximum(h + identity, 0.0)


def _init_params(key, cin, cout, stride):
    ks = jax.random.split(key, 6)

    def bn(k, c):
        k1, k2, k3, k4 = jax.random.split(k, 4)
        gamma = 1.0 + 0.1 * jax.random.normal(k1, (c,), jnp.float32)
        beta = 0.1 * jax.random.normal(k2, (c,), jnp.float32)
        mean = 0.1 * jax.random.normal(k3, (c,), jnp.float32)
        var = 0.5 + jnp.abs(jax.random.normal(k4, (c,), jnp.float32))
        return (gamma, beta, mean, var)

    p = {
        "w1": 0.3 * jax.random.normal(ks[0], (3, 3, cin, cout), jnp.float32),
        "bn1": bn(ks[1], cout),
        "w2": 0.3 * jax.random.normal(ks[2], (3, 3, cout, cout), jnp.float32),
        "bn2": bn(ks[3], cout),
    }
    if stride != 1:
        p["wd"] = 0.3 * jax.random.normal(ks[4], (1, 1, cin, cout), jnp.float32)
        p["bnd"] = bn(ks[5], cout)
    return p


if __name__ == "__main__":
    key = jax.random.PRNGKey(0)
    kx, kp2, kp1 = jax.random.split(key, 3)

    x = jax.random.normal(kx, (2, 4, 16, 16), dtype=jnp.float32)  # NCHW

    # Tolerance reflects bf16 MXU inputs (f32 accumulation) vs an f32 reference.
    ATOL, RTOL = 1e-1, 1e-1

    # Case 1: stride=2 with channel expansion -> exercises the 1x1 downsample path.
    params_s2 = _init_params(kp2, 4, 8, stride=2)
    out_s2 = jax.block_until_ready(basic_block_forward(x, params_s2, stride=2))
    ref_s2 = basic_block_reference(x, params_s2, stride=2)
    assert out_s2.shape == (2, 8, 8, 8), out_s2.shape
    assert bool(jnp.allclose(out_s2, ref_s2, atol=ATOL, rtol=RTOL)), \
        f"stride=2 mismatch, max err {float(jnp.max(jnp.abs(out_s2 - ref_s2)))}"

    # Case 2: stride=1, identity shortcut.
    params_s1 = _init_params(kp1, 4, 4, stride=1)
    out_s1 = jax.block_until_ready(basic_block_forward(x, params_s1, stride=1))
    ref_s1 = basic_block_reference(x, params_s1, stride=1)
    assert out_s1.shape == (2, 4, 16, 16), out_s1.shape
    assert bool(jnp.allclose(out_s1, ref_s1, atol=ATOL, rtol=RTOL)), \
        f"stride=1 mismatch, max err {float(jnp.max(jnp.abs(out_s1 - ref_s1)))}"

    print("KERNEL_OK")
</pallas_src>

<mosaic_0001>
module attributes {stable_mosaic.version = 11 : i64} {
  func.func @kernel(%arg0: i32, %arg1: memref<1x9x9x16xf32, #tpu.memory_space<vmem>>, %arg2: memref<64x128xbf16, #tpu.memory_space<vmem>>, %arg3: memref<1x128xf32, #tpu.memory_space<vmem>>, %arg4: memref<1x64x128xbf16, #tpu.memory_space<vmem>>) attributes {dimension_semantics = [#tpu.dimension_semantics<parallel>], iteration_bounds = array<i64: 2>, scalar_prefetch = 0 : i64, scratch_operands = 0 : i64, tpu.core_type = #tpu.core_type<tc>, window_params = [{transform_indices = @transform_0, window_bounds = array<i64: 1, 9, 9, 16>}, {pipeline_mode = #tpu.pipeline_mode<synchronous>, transform_indices = @transform_1, window_bounds = array<i64: 64, 128>}, {pipeline_mode = #tpu.pipeline_mode<synchronous>, transform_indices = @transform_2, window_bounds = array<i64: 1, 128>}, {transform_indices = @transform_3, window_bounds = array<i64: 1, 64, 128>}]} {
    %c0 = arith.constant 0 : index
    %c0_0 = arith.constant 0 : index
    %c0_1 = arith.constant 0 : index
    %c0_2 = arith.constant 0 : index
    %0 = vector.load %arg1[%c0, %c0_0, %c0_1, %c0_2] : memref<1x9x9x16xf32, #tpu.memory_space<vmem>>, vector<1x9x9x16xf32>
    %1 = vector.shape_cast %0 : vector<1x9x9x16xf32> to vector<9x9x16xf32>
    %2 = vector.extract_strided_slice %1 {offsets = [0, 0, 0], sizes = [8, 8, 16], strides = [1, 1, 1]} : vector<9x9x16xf32> to vector<8x8x16xf32>
    %3 = vector.extract_strided_slice %1 {offsets = [0, 1, 0], sizes = [8, 8, 16], strides = [1, 1, 1]} : vector<9x9x16xf32> to vector<8x8x16xf32>
    %4 = vector.extract_strided_slice %1 {offsets = [1, 0, 0], sizes = [8, 8, 16], strides = [1, 1, 1]} : vector<9x9x16xf32> to vector<8x8x16xf32>
    %5 = vector.extract_strided_slice %1 {offsets = [1, 1, 0], sizes = [8, 8, 16], strides = [1, 1, 1]} : vector<9x9x16xf32> to vector<8x8x16xf32>
    %6 = tpu.concatenate %2, %3, %4, %5 in 2 : vector<8x8x16xf32>, vector<8x8x16xf32>, vector<8x8x16xf32>, vector<8x8x16xf32> -> vector<8x8x64xf32>
    %7 = vector.shape_cast %6 : vector<8x8x64xf32> to vector<64x64xf32>
    %8 = arith.truncf %7 : vector<64x64xf32> to vector<64x64xbf16>
    %c0_3 = arith.constant 0 : index
    %c0_4 = arith.constant 0 : index
    %9 = vector.load %arg2[%c0_3, %c0_4] : memref<64x128xbf16, #tpu.memory_space<vmem>>, vector<64x128xbf16>
    %cst = arith.constant dense<0.000000e+00> : vector<64x128xf32>
    %10 = tpu.matmul %8, %9, %cst {dimension_numbers = #tpu.dot_dimension_numbers<[1], [0], [0], [1], [0, 0, 1, 1], [], []>} : vector<64x64xbf16>, vector<64x128xbf16>, vector<64x128xf32> -> vector<64x128xf32>
    %c0_5 = arith.constant 0 : index
    %c0_6 = arith.constant 0 : index
    %11 = vector.load %arg3[%c0_5, %c0_6] : memref<1x128xf32, #tpu.memory_space<vmem>>, vector<1x128xf32>
    %12 = vector.broadcast %11 : vector<1x128xf32> to vector<64x128xf32>
    %13 = arith.addf %10, %12 : vector<64x128xf32>
    %cst_7 = arith.constant 0.000000e+00 : f32
    %14 = vector.broadcast %cst_7 : f32 to vector<64x128xf32>
    %15 = arith.maximumf %13, %14 : vector<64x128xf32>
    %16 = arith.truncf %15 : vector<64x128xf32> to vector<64x128xbf16>
    %c0_8 = arith.constant 0 : index
    %c0_9 = arith.constant 0 : index
    %c0_10 = arith.constant 0 : index
    %17 = vector.load %arg4[%c0_8, %c0_9, %c0_10] : memref<1x64x128xbf16, #tpu.memory_space<vmem>>, vector<1x64x128xbf16>
    %18 = vector.shape_cast %17 : vector<1x64x128xbf16> to vector<64x128xbf16>
    %19 = vector.shape_cast %16 : vector<64x128xbf16> to vector<1x64x128xbf16>
    tpu.vector_store %arg4[%c0_8, %c0_9, %c0_10], %19 {strides = array<i32>} : memref<1x64x128xbf16, #tpu.memory_space<vmem>>, vector<1x64x128xbf16>,
    return
  }
  func.func @transform_0(%arg0: i32) -> (i32, i32, i32, i32) {
    %c0_i32 = arith.constant 0 : i32
    %c0_i32_0 = arith.constant 0 : i32
    %c0_i32_1 = arith.constant 0 : i32
    %c0_i32_2 = arith.constant 0 : i32
    return %arg0, %c0_i32, %c0_i32_0, %c0_i32_1 : i32, i32, i32, i32
  }
  func.func @transform_1(%arg0: i32) -> (i32, i32) {
    %c0_i32 = arith.constant 0 : i32
    %c0_i32_0 = arith.constant 0 : i32
    %c0_i32_1 = arith.constant 0 : i32
    return %c0_i32, %c0_i32_0 : i32, i32
  }
  func.func @transform_2(%arg0: i32) -> (i32, i32) {
    %c0_i32 = arith.constant 0 : i32
    %c0_i32_0 = arith.constant 0 : i32
    %c0_i32_1 = arith.constant 0 : i32
    return %c0_i32, %c0_i32_0 : i32, i32
  }
  func.func @transform_3(%arg0: i32) -> (i32, i32, i32) {
    %c0_i32 = arith.constant 0 : i32
    %c0_i32_0 = arith.constant 0 : i32
    %c0_i32_1 = arith.constant 0 : i32
    return %arg0, %c0_i32, %c0_i32_0 : i32, i32, i32
  }
}

</mosaic_0001>

<bundles_post_ra>
// kernel: tpu_custom_call.1
= control target key start
LH: loop header
LB: loop body
LE: loop exit
PB: predicated region body
PF: predicated region fallthrough
CT: control target
= control target key end

     0   :  { %8 = vsyncpa [#allocation3], 0  ;;  %s1091_s0 = inlined_call_operand.vmem [shape: f32[2,9,9,16], index: 0, kind: input, shape index: {}]   ;;  %s1092_s1 = inlined_call_operand.vmem [shape: bf16[64,128], index: 1, kind: input, shape index: {}]   ;;  %s1093_s2 = inlined_call_operand.vmem [shape: f32[1,128], index: 2, kind: input, shape index: {}]   ;;  %s1094_s3 = inlined_call_operand.hbm [shape: bf16[2,64,128], index: 3, kind: output, shape index: {}]  }
   0x1   :  { %10 = vsyncpa [#allocation3 + $0x1], 0  ;;  %s869_s12 = smov 0   ;;  %s871_s13 = smov 0  }
   0x2   :  { %s873_s14 = smov 0   ;;  %s875_s15 = smov 0  }
   0x3 LB: > { %s890_s16 = sadd.s32 4294967295, %s841_s15   ;;  %s578_s17 = sadd.s32 4294967294, %s841_s15   ;;  %s841_s15 = sphi %s875_s15, %s1100_s15   ;;  %s837_s14 = sphi %s873_s14, %s1099_s14   ;;  %s833_s13 = sphi %s871_s13, %s1098_s13   ;;  %s829_s12 = sphi %s869_s12, %s1097_s12  }
   0x4   : > { %s894_s18 = sadd.s32 1, %s841_s15   ;;  %s91_s19 = sadd.s32 1, %s837_s14 }
   0x5   : > { %s88_s20 = ssub.s32 %s841_s15, %s894_s18  ;;  %p101_p0 = scmp.ne.s32.totalorder %s837_s14, %s833_s13 }
   0x6   : > { %p89_p1 = scmp.eq.s32.totalorder %s88_s20, 0  ;;  %p102_p2 = scmp.eq.s32.totalorder %s890_s16, 1 }
   0x7   : > { %p107_p3 = scmp.ne.s32.totalorder %s833_s13, %s829_s12  ;;  %p108_p4 = scmp.eq.s32.totalorder %s578_s17, 1 }
   0x8   : > { %s905_s21 = scalar_select %p89_p1, %s837_s14, %s91_s19  }
   0x9   : > { %p907_p5 = por %p102_p2, %p101_p0  ;;  %p911_p6 = por %p108_p4, %p107_p3 }
   0xa   : > { %p581_p7 = scmp.ge.s32.totalorder %s841_s15, 1  ;;  %p140_p8 = scmp.lt.s32.totalorder %s841_s15, 3 }
   0xc   : > { %p141_p9 = pnand %p581_p7, %p140_p8 }
   0xd   : > { %p164_p10 = scmp.lt.s32.totalorder (!%p141_p9), %s890_s16, 1  ;;  %v775_v0 = vld [vmem:[%s1092_s1] sm:$0xff] (!%p141_p9)   ;;  %vm204_vm0 = vcmask (!%p141_p9), 1046528   ;;  %s843_s4 = smov (!%p141_p9), 32   ;;  %v776_v37 = vld [vmem:[%s1092_s1 + $0x8] sm:$0xff] (!%p141_p9)   ;;  %v777_v42 = vld [vmem:[%s1092_s1 + $0x10] sm:$0xff] (!%p141_p9)  }
   0xe   : > { %144 = sbr.rel (%p141_p9) target bundleno = 407 (0x197), region = 32  ;;  %646 = vmatprep.subr.bf16.mxu0 (!%p141_p9), %v775_v0  ;;  %662 = vmatprep.subr.bf16.mxu1 (!%p141_p9), %v775_v0  ;;  %s844_s9 = smov (!%p141_p9), 16   ;;  %v778_v51 = vld [vmem:[%s1092_s1 + $0x18] sm:$0xff] (!%p141_p9)   ;;  %vm306_vm1 = vcmask (!%p141_p9), 130048   ;;  %vm315_vm2 = vcmask (!%p141_p9), 261120   ;;  %vm324_vm3 = vcmask (!%p141_p9), 392192  }
   0xf   : > { %647 = vmatpush3.bf16.msra.mxu0 (!%p141_p9), %v775_v0  ;;  %666 = vmatpush3.bf16.msra.mxu1 (!%p141_p9), %v775_v0  ;;  %s845_s17 = smov (!%p141_p9), 48   ;;  %vm376_vm4 = vcmask (!%p141_p9), 523264   ;;  %s161_s19 = sand.u32 (!%p141_p9), 1, %s833_s13  }
  0x10   : > { %648 = vmatprep.subr.bf16.mxu0 (!%p141_p9), %v776_v37  ;;  %663 = vmatprep.subr.bf16.mxu1 (!%p141_p9), %v776_v37  ;;  %s846_s6 = smov (!%p141_p9), [#allocation2]  }
  0x11   : > { %s783_s7 = sshll.u32 (!%p141_p9), %s846_s6, 4  ;;  %s784_s7 = int_to_ptr.vmem [resolvable:$false] %s783_s7 }
  0x12   : > { %s785_s8 = scalar_lea.vmem (!%p141_p9), %s784_s7, 1024 }
  0x13   : > { %649 = vmatpush3.bf16.msra.mxu0 (!%p141_p9), %v776_v37  ;;  %667 = vmatpush3.bf16.msra.mxu1 (!%p141_p9), %v776_v37 }
  0x14   : > { %650 = vmatprep.subr.bf16.mxu0 (!%p141_p9), %v777_v42  ;;  %664 = vmatprep.subr.bf16.mxu1 (!%p141_p9), %v777_v42 }
  0x15   : > { %s165_s24 = scalar_select %p164_p10, %s890_s16, 1 }
  0x17   : > { %s670_s25 = smul.u32 144, %s165_s24  ;;  %651 = vmatpush3.bf16.msra.mxu0 %v777_v42  ;;  %668 = vmatpush3.bf16.msra.mxu1 %v777_v42 }
  0x18   : > { %652 = vmatprep.subr.bf16.mxu0 %v778_v51  ;;  %665 = vmatprep.subr.bf16.mxu1 %v778_v51 }
  0x19   : > { %s922_s28 = scalar_lea.vmem %s1091_s0, %s670_s25  ;;  %s582_s25 = sshll.u32 %s161_s19, 5 }
  0x1a   : > { %v928_v1 = vld [vmem:[%s922_s28 + $0x50] sm:$0xff]  ;;  %v931_v2 = vld [vmem:[%s922_s28 + $0x60] sm:$0xff]  ;;  %v175_v8 = vld [vmem:[%s922_s28 + $0x28] sm:$0x1]  ;;  %s163_s26 = scalar_lea.vmem [#allocation2], %s582_s25 }
  0x1b   : > { %v934_v3 = vld [vmem:[%s922_s28 + $0x10] sm:$0xff]  ;;  %v223_v4 = vrot.slane %v931_v2, 1  ;;  %v720_v5 = vpack.i.bf16 %v931_v2, %v928_v1  ;;  %v940_v6 = vld [vmem:[%s922_s28 + $0x20] sm:$0xff]  ;;  %v177_v12 = vld [vmem:[%s922_s28 + $0x38] sm:$0x1]  ;;  %v212_v13 = vrot.slane %v175_v8, 1  ;;  %653 = vmatpush3.bf16.msra.mxu0 %v778_v51  ;;  %669 = vmatpush3.bf16.msra.mxu1 %v778_v51 }
  0x1c   : > { %v208_v7 = vrot.slane %v934_v3, 1  ;;  %v211_v9 = vrot.slane %v940_v6, 1  ;;  %v715_v10 = vpack.i.bf16 %v940_v6, %v934_v3  ;;  %v948_v11 = vld [vmem:[%s922_s28 + $0x30] sm:$0xff]  ;;  %v952_v14 = vld [vmem:[%s922_s28] sm:$0xff]  ;;  %v215_v16 = vrot.slane %v177_v12, 1  ;;  %s516_s27 = sshll.u32 %s163_s26, 4  ;;  %s1041_s27 = int_to_ptr.vmem [resolvable:$true] %s516_s27 }
  0x1d   : > { %721 = vrot.lane.b32.xlu1 %v720_v5, %s843_s4  ;;  %v214_v15 = vrot.slane %v948_v11, 1  ;;  %v171_v17 = vld [vmem:[%s922_s28 + $0x8] sm:$0x1]  ;;  %v173_v18 = vld [vmem:[%s922_s28 + $0x18] sm:$0x1]  ;;  %v205_v20 = vrot.slane %v952_v14, 1  ;;  %p786_p0 = scmp.lt.s32.totalorder %s1041_s27, %s784_s7 }
  0x1e   : > { %716 = vrot.lane.b32.xlu0 %v715_v10, %s843_s4  ;;  %v213_v19 = vsel %vm204_vm0, %v211_v9, %v212_v13  ;;  %v206_v21 = vrot.slane %v171_v17, 1  ;;  %v209_v22 = vrot.slane %v173_v18, 1  ;;  %v183_v23 = vld [vmem:[%s922_s28 + $0x68] sm:$0x1]  ;;  %v963_v24 = vld [vmem:[%s922_s28 + $0x70] sm:$0xff]  ;;  %v220_v25 = vrot.slane %v928_v1, 1 }
  0x1f   : > { %v216_v26 = vsel %vm204_vm0, %v214_v15, %v215_v16  ;;  %v185_v27 = vld [vmem:[%s922_s28 + $0x78] sm:$0x1]  ;;  %v224_v28 = vrot.slane %v183_v23, 1  ;;  %v226_v29 = vrot.slane %v963_v24, 1  ;;  %v970_v30 = vld [vmem:[%s922_s28 + $0x40] sm:$0xff]  ;;  %s779_s5 = scalar_lea.vmem %s1041_s27, 512 }
  0x20   : > { %v740_v31 = vpack.i.bf16 %v216_v26, %v213_v19  ;;  %v207_v32 = vsel %vm204_vm0, %v205_v20, %v206_v21  ;;  %v210_v33 = vsel %vm204_vm0, %v208_v7, %v209_v22  ;;  %v227_v34 = vrot.slane %v185_v27, 1  ;;  %v179_v35 = vld [vmem:[%s922_s28 + $0x48] sm:$0x1]  ;;  %v181_v36 = vld [vmem:[%s922_s28 + $0x58] sm:$0x1]  ;;  %v186_v47 = vld [vmem:[%s922_s28 + $0x80] sm:$0xff]  ;;  %p780_p11 = scmp.ne.s32.totalorder %s1041_s27, %s779_s5  ;;  %p787_p1 = scmp.lt.s32.totalorder %s785_s8, %s779_s5 }
  0x21   : > { %v725_v38 = vpack.i.bf16 %v210_v33, %v207_v32  ;;  %v225_v39 = vsel %vm204_vm0, %v223_v4, %v224_v28  ;;  %v217_v40 = vrot.slane %v970_v30, 1  ;;  %v218_v41 = vrot.slane %v179_v35, 1  ;;  %v187_v49 = vld [vmem:[%s922_s28 + $0x88] sm:$0x1]  ;;  %s614_s28 = sshll.u32 %s890_s16, 9 }
  0x22   : > { %741 = vrot.lane.b32.xlu1 %v740_v31, %s844_s9  ;;  %v228_v43 = vsel %vm204_vm0, %v226_v29, %v227_v34  ;;  %v221_v44 = vrot.slane %v181_v36, 1  ;;  %v750_v52 = vpack.i.bf16 %v186_v47, %v963_v24  ;;  %v279_v53 = vrot.slane %v186_v47, 1  ;;  %s1046_s16 = scalar_lea.hbm %s1094_s3, %s614_s28  ;;  %p781_p12 = pnand %p780_p11, %p907_p5 }
  0x23   : > { %726 = vrot.lane.b32.xlu0 %v725_v38, %s844_s9  ;;  %v745_v45 = vpack.i.bf16 %v228_v43, %v225_v39  ;;  %v219_v46 = vsel %vm204_vm0, %v217_v40, %v218_v41  ;;  %v735_v54 = vpack.i.bf16 %v970_v30, %v948_v11  ;;  %v280_v55 = vrot.slane %v187_v49, 1  ;;  %p788_p2 = por %p787_p1, %p786_p0 }
  0x24   : > { %v222_v48 = vsel %vm204_vm0, %v220_v25, %v221_v44  ;;  %v755_v57 = vpack.i.bf16 %v213_v19, %v210_v33  ;;  %v765_v60 = vpack.i.bf16 %v219_v46, %v216_v26  ;;  %p782_p13 = pneg %p781_p12 }
  0x25   : > { %v730_v50 = vpack.i.bf16 %v222_v48, %v219_v46  ;;  %v760_v56 = vpack.i.bf16 %v225_v39, %v222_v48  ;;  %v281_v58 = vsel %vm204_vm0, %v279_v53, %v280_v55 }
  0x26   : > { %746 = vrot.lane.b32.xlu1 %v745_v45, %s844_s9  ;;  %v770_v59 = vpack.i.bf16 %v281_v58, %v228_v43  ;;  %p789_p3 = pnand %p788_p2, %p782_p13 }
  0x27   : > { %731 = vrot.lane.b32.xlu0 %v730_v50, %s844_s9 }
  0x2a   : > { %751 = vrot.lane.b32.xlu1 %v750_v52, %s843_s4 }
  0x2b   : > { %736 = vrot.lane.b32.xlu0 %v735_v54, %s843_s4  ;;  %s1050_s4 = scalar_lea.sflag [#allocation3], %s161_s19 }
  0x2e   : > { %761 = vrot.lane.b32.xlu1 %v760_v56, %s845_s17 }
  0x2f   : > { %756 = vrot.lane.b32.xlu0 %v755_v57, %s845_s17 }
  0x32   : > { %771 = vrot.lane.b32.xlu1 %v770_v59, %s845_s17 }
  0x33   : > { %766 = vrot.lane.b32.xlu0 %v765_v60, %s845_s17 }
  0x8f   : > { %v722_v61 = vpop.permute.xlu1 %721 }
  0x90   : > { %v717_v62 = vpop.permute.xlu0 %716  ;;  %v724_v19 = vunpack.i.h.bf16 %v722_v61  ;;  %v723_v20 = vunpack.i.l.bf16 %v722_v61  ;;  %v584_v61 = vld [vmem:[%s1093_s2] ss:$0 sm:$0xff] }
  0x91   : > { %v719_v21 = vunpack.i.h.bf16 %v717_v62  ;;  %v718_v22 = vunpack.i.l.bf16 %v717_v62 }
  0x94   : > { %v742_v63 = vpop.permute.xlu1 %741 }
  0x95   : > { %v727_v0 = vpop.permute.xlu0 %726  ;;  %v744_v9 = vunpack.i.h.bf16 %v742_v63  ;;  %v743_v10 = vunpack.i.l.bf16 %v742_v63 }
  0x96   : > { %v729_v5 = vunpack.i.h.bf16 %v727_v0  ;;  %v728_v7 = vunpack.i.l.bf16 %v727_v0 }
  0x97   : > { %v310_v23 = vsel %vm306_vm1, %v948_v11, %v744_v9  ;;  %v309_v25 = vsel %vm306_vm1, %v940_v6, %v743_v10 }
  0x98   : > { %v747_v4 = vpop.permute.xlu1 %746  ;;  %v308_v16 = vsel %vm306_vm1, %v934_v3, %v729_v5  ;;  %v307_v17 = vsel %vm306_vm1, %v952_v14, %v728_v7 }
  0x99   : > { %v732_v8 = vpop.permute.xlu0 %731  ;;  %v749_v14 = vunpack.i.h.bf16 %v747_v4  ;;  %v748_v27 = vunpack.i.l.bf16 %v747_v4  ;;  %v316_v29 = vsel %vm315_vm2, %v307_v17, %v718_v22  ;;  %v317_v31 = vsel %vm315_vm2, %v308_v16, %v719_v21 }
  0x9a   : > { %v734_v12 = vunpack.i.h.bf16 %v732_v8  ;;  %v733_v13 = vunpack.i.l.bf16 %v732_v8 }
  0x9b   : > { %v314_v41 = vsel %vm306_vm1, %v963_v24, %v749_v14  ;;  %v313_v46 = vsel %vm306_vm1, %v931_v2, %v748_v27 }
  0x9c   : > { %v752_v15 = vpop.permute.xlu1 %751  ;;  %v312_v26 = vsel %vm306_vm1, %v928_v1, %v734_v12  ;;  %v311_v3 = vsel %vm306_vm1, %v970_v30, %v733_v13 }
  0x9d   : > { %v737_v18 = vpop.permute.xlu0 %736  ;;  %v754_v32 = vunpack.i.h.bf16 %v752_v15  ;;  %v753_v33 = vunpack.i.l.bf16 %v752_v15  ;;  %v320_v37 = vsel %vm315_vm2, %v311_v3, %v723_v20  ;;  %v321_v1 = vsel %vm315_vm2, %v312_v26, %v724_v19 }
  0x9e   : > { %v739_v38 = vunpack.i.h.bf16 %v737_v18  ;;  %v738_v30 = vunpack.i.l.bf16 %v737_v18 }
  0x9f   : > { %v322_v51 = vsel %vm315_vm2, %v313_v46, %v753_v33  ;;  %v323_v52 = vsel %vm315_vm2, %v314_v41, %v754_v32 }
  0xa0   : > { %v762_v28 = vpop.permute.xlu1 %761  ;;  %v319_v54 = vsel %vm315_vm2, %v310_v23, %v739_v38  ;;  %v318_v55 = vsel %vm315_vm2, %v309_v25, %v738_v30 }
  0xa1   : > { %v764_v34 = vunpack.i.h.bf16 %v762_v28  ;;  %v763_v11 = vunpack.i.l.bf16 %v762_v28  ;;  %v757_v35 = vpop.permute.xlu0 %756 }
  0xa2   : > { %v759_v36 = vunpack.i.h.bf16 %v757_v35  ;;  %v758_v6 = vunpack.i.l.bf16 %v757_v35 }
  0xa3   : > { %v329_v39 = vsel %vm324_vm3, %v320_v37, %v763_v11  ;;  %v330_v40 = vsel %vm324_vm3, %v321_v1, %v764_v34 }
  0xa4   : > { %v772_v42 = vpop.permute.xlu1 %771  ;;  %v325_v43 = vsel %vm324_vm3, %v316_v29, %v758_v6  ;;  %v326_v44 = vsel %vm324_vm3, %v317_v31, %v759_v36  ;;  %v335_v45 = vpack.c.bf16 %v330_v40, %v329_v39 }
  0xa5   : > { %v774_v47 = vunpack.i.h.bf16 %v772_v42  ;;  %v773_v48 = vunpack.i.l.bf16 %v772_v42  ;;  %v767_v49 = vpop.permute.xlu0 %766  ;;  %v333_v50 = vpack.c.bf16 %v326_v44, %v325_v43 }
  0xa6   : > { %v769_v53 = vunpack.i.h.bf16 %v767_v49  ;;  %v768_v24 = vunpack.i.l.bf16 %v767_v49  ;;  %658 = vmatprep.mubr.msk.bf16.mxu1 %vm376_vm4, %v335_v45 }
  0xa7   : > { %v331_v2 = vsel %vm324_vm3, %v322_v51, %v773_v48  ;;  %v332_v56 = vsel %vm324_vm3, %v323_v52, %v774_v47  ;;  %654 = vmatprep.mubr.msk.bf16.mxu0 %vm376_vm4, %v333_v50 }
  0xa8   : > { %v336_v57 = vpack.c.bf16 %v332_v56, %v331_v2  ;;  %v327_v58 = vsel %vm324_vm3, %v318_v55, %v768_v24  ;;  %v328_v59 = vsel %vm324_vm3, %v319_v54, %v769_v53 }
  0xa9   : > { %v334_v60 = vpack.c.bf16 %v328_v59, %v327_v58 }
  0xaa   : > { %659 = vmatmul.mubr.msk.bf16.vlgmr.msra.gmra.mrb[0].mxu1 %vm376_vm4, %v336_v57 }
  0xab   : > { %655 = vmatmul.mubr.msk.bf16.vlgmr.msra.gmra.mrb[0].mxu0 %vm376_vm4, %v334_v60 }
 0x17d   : > { %v660_v62 = vpop.f32.mrb[0].mxu1 }
 0x17e   : > { %v656_v63 = vpop.f32.mrb[0].mxu0  ;;  %v448_v0 = vadd.f32 %v660_v62, %v584_v61  ;;  %v439_v4 = vpop.f32.mrb[1].mxu1 }
 0x17f   : > { %v432_v5 = vadd.f32 %v656_v63, %v584_v61  ;;  %v423_v7 = vpop.f32.mrb[1].mxu0  ;;  %v440_v8 = vadd.f32 %v584_v61, %v439_v4  ;;  %v661_v9 = vpop.f32.mrb[2].mxu1 }
 0x180   : > { %v424_v10 = vadd.f32 %v584_v61, %v423_v7  ;;  %v657_v12 = vpop.f32.mrb[2].mxu0  ;;  %v451_v13 = vadd.f32 %v661_v9, %v584_v61  ;;  %v442_v15 = vpop.f32.mrb[3].mxu1  ;;  %v460_v19 = vmax.f32 %v448_v0, 0.0 }
 0x181   : > { %v435_v16 = vadd.f32 %v657_v12, %v584_v61  ;;  %v426_v17 = vpop.f32.mrb[3].mxu0  ;;  %v443_v18 = vadd.f32 %v584_v61, %v442_v15  ;;  %v456_v22 = vmax.f32 %v432_v5, 0.0  ;;  %v458_v23 = vmax.f32 %v440_v8, 0.0 }
 0x182   : > { %v461_v20 = vmax.f32 %v451_v13, 0.0  ;;  %v427_v21 = vadd.f32 %v584_v61, %v426_v17  ;;  %v454_v3 = vmax.f32 %v424_v10, 0.0 }
 0x183   : > { %v457_v25 = vmax.f32 %v435_v16, 0.0  ;;  %v459_v26 = vmax.f32 %v443_v18, 0.0 }
 0x184   : > { %v633_v14 = vpack.c.bf16 %v461_v20, %v460_v19  ;;  %v455_v27 = vmax.f32 %v427_v21, 0.0 }
 0x185   : > { %v623_v28 = vpack.c.bf16 %v457_v25, %v456_v22  ;;  %v628_v29 = vpack.c.bf16 %v459_v26, %v458_v23 }
 0x186   : > { %637 = vst [vmem:[%s163_s26 + $0x18] sm:$0xff] %v633_v14   ;;  %v618_v31 = vpack.c.bf16 %v455_v27, %v454_v3 }
 0x187   : > { %635 = vst [vmem:[%s163_s26 + $0x8] sm:$0xff] %v623_v28   ;;  %636 = vst [vmem:[%s163_s26 + $0x10] sm:$0xff] %v628_v29  }
 0x188   : > { %619 = vst [vmem:[%s163_s26] sm:$0xff] %v618_v31  }
 0x189   : > { %792 = shalt.err (!%p789_p3)
}
 0x18a   : > { %s793_s9 = scalar_lea.hbm %s1046_s16, 512  ;;  %s797_s17 = scalar_lea.hbm %s1094_s3, 1024 }
 0x18b   : > { %p794_p4 = scmp.ne.s32.totalorder %s1046_s16, %s793_s9  ;;  %p798_p9 = scmp.lt.u32.totalorder %s1046_s16, %s1094_s3 }
 0x18c   : > { %p799_p10 = scmp.lt.u32.totalorder %s797_s17, %s793_s9  ;;  %p801_p12 = scmp.lt.u32.totalorder %s793_s9, %s1046_s16 }
 0x18d   : > { %p795_p7 = pnand %p794_p4, %p907_p5 }
 0x18e   : > { %p800_p11 = por %p799_p10, %p798_p9 }
 0x18f   : > { %p796_p8 = pneg %p795_p7 }
 0x190   : > { %p802_p13 = por %p801_p12, %p800_p11 }
 0x192   : > { %p803_p0 = pnand %p802_p13, %p796_p8 }
 0x194   : > { %806 = shalt.err (!%p803_p0)
}
 0x195   : > { %s847_s24 = smov 64   ;;  %s848_s25 = smov 4  }
 0x196   : > { %671 = dma.vmem_to_hbm [thread:$0]  (%p907_p5), %s1041_s27, 512, %s1046_s16, %s1050_s4, %s847_s24, %s847_s24, %s848_s25  }
 0x197 PF: > { %p677_p1 = scmp.ge.s32.totalorder %s841_s15, 2  ;;  %s531_s26 = sand.u32 1, %s829_s12  }
 0x198   : > { %s532_s28 = scalar_lea.sflag [#allocation3], %s531_s26 }
 0x199   : > { %p674_p2 = pnand %p677_p1, %p911_p6 }
 0x19b   : > { %824 = dma.done.wait (!%p674_p2), %s532_s28, 512  }
 0x19c   : > { %826 = vsyncadd (!%p674_p2), %s532_s28, 4294966784  ;;  %p13_p3 = scmp.ge.s32.totalorder %s894_s18, 4   ;;  %s1097_s12 = smov %s833_s13 }
 0x19d   : > { %s1098_s13 = smov %s837_s14  ;;  %s1099_s14 = smov %s905_s21 }
 0x19e   : > { %s1100_s15 = smov %s894_s18  ;;  %15 = sbr.rel (!%p13_p3) target bundleno = 3 (0x3), region = 67 }
 0x1a5   :  { %537 = vsyncpa [#allocation3], 1 }
 0x1a6   :  { %539 = vsyncpa [#allocation3 + $0x1], 1 }

</bundles_post_ra>
